<compile_context>
chip_gen: v5e
topology: v5e:2x2
jax: 0.10.0
libtpu: 0.0.40
codegen_flags: <defaults>
</compile_context>

<pallas_src>
import math

import jax
import jax.numpy as jnp
from jax import lax
from jax.experimental import pallas as pl
from jax.experimental.pallas import tpu as pltpu

EPS = 1e-5


# --------------------------------------------------------------------------------------
# One-time constant construction (amortized across forward calls)
# --------------------------------------------------------------------------------------
def _padded_channels(C, W, lane=128):
    """Smallest Cp >= C such that W*Cp is a multiple of 128 (lane-dense packing)."""
    need = lane // math.gcd(W, lane)
    Cp = -(-C // need) * need
    if Cp > max(4 * C, 32):           # too wasteful for this W; settle for sublane packing
        Cp = -(-C // 8) * 8           # TODO(synk): repack (fold H pairs) instead
    return Cp


def _band_weights(w, W, Cp):
    """Fold a (KH, KW, Cin, Cout) conv kernel into ONE wide block-banded matrix.

    Returns (W*Cp, KH*W*Cp).  Column block dy maps a packed input row (x_in*Cp + ci)
    to a packed output column (x_out*Cp + co) for vertical tap dy.  The W-direction
    SAME zero padding is folded in; channels are zero-padded to Cp.
    """
    KH, KW, Cin, Cout = w.shape
    w = jnp.pad(w.astype(jnp.float32), ((0, 0), (0, 0), (0, Cp - Cin), (0, Cp - Cout)))
    pad = (KW - 1) // 2
    xs = jnp.arange(W)
    # sel[x_out, dx, x_in] = 1 iff x_in == x_out + dx - pad (in-range only)
    sel = ((xs[:, None, None] + jnp.arange(KW)[None, :, None] - pad)
           == xs[None, None, :]).astype(jnp.float32)               # (W, KW, W)
    band = jnp.einsum('xdn,ydio->ynixo', sel, w)                   # (KH, x_in, ci, x_out, co)
    band = band.reshape(KH, W * Cp, W * Cp)
    return jnp.concatenate([band[dy] for dy in range(KH)], axis=1)  # (W*Cp, KH*W*Cp)


def _shift_matrices(N, H, KH):
    """(KH, N*H, N*H) row-selection matrices: S[dy, ro, ri] = 1 iff ri is the input
    row feeding output row ro at vertical tap dy (same image, in-range -> folds the
    H-direction zero padding; no padded scratch buffer needed)."""
    pad = (KH - 1) // 2
    r = jnp.arange(N * H)
    img, row = r // H, r % H
    dy = jnp.arange(KH)[:, None, None] - pad
    same_img = img[None, :, None] == img[None, None, :]
    hit = row[None, None, :] == row[None, :, None] + dy
    return (same_img & hit).astype(jnp.float32)


def _channel_projector(W, Cp, count):
    """(W*Cp, W*Cp) same-channel projector, pre-scaled by 1/(N*H*W): one matmul turns
    per-lane column sums into per-lane channel means."""
    lane_c = jnp.arange(W * Cp) % Cp
    return (lane_c[:, None] == lane_c[None, :]).astype(jnp.float32) / float(count)


def prepare_residual_block(params, x_shape):
    """One-time parameter prep (review: cache the O((W*C)^2) band construction)."""
    w1, b1, g1, be1, w2, b2, g2, be2 = params
    del b1, b2  # exactly cancelled by training-mode BatchNorm mean subtraction
    N, C, H, W = x_shape
    assert w1.shape == w2.shape
    KH = int(w1.shape[0])
    Cp = _padded_channels(C, W)

    def lanes(v):  # (1, C) -> per-lane (1, W*Cp); padded channels get 0
        v = jnp.pad(jnp.asarray(v, jnp.float32).reshape(1, C), ((0, 0), (0, Cp - C)))
        return jnp.tile(v, (1, W))

    return (
        _band_weights(jnp.asarray(w1), W, Cp).astype(jnp.bfloat16),   # bf16 MXU inputs
        _band_weights(jnp.asarray(w2), W, Cp).astype(jnp.bfloat16),
        _shift_matrices(N, H, KH),
        _channel_projector(W, Cp, N * H * W),
        lanes(g1), lanes(be1), lanes(g2), lanes(be2),
    )


# --------------------------------------------------------------------------------------
# Fused kernel
# --------------------------------------------------------------------------------------
def residual_block_kernel(x_ref, band1_ref, band2_ref, shift_ref, proj_ref,
                          g1_ref, be1_ref, g2_ref, be2_ref, out_ref):
    """Fused residual block in a lane-dense (N*H, W*Cp) packed layout.

    x_ref      : (NH, WCp)            packed NHWC input (also the residual), f32
    bandK_ref  : (WCp, KH*WCp)        block-banded conv weights, bf16
    shift_ref  : (KH, NH, NH)         vertical tap / H-padding selection, f32
    proj_ref   : (WCp, WCp)           same-channel projector scaled by 1/(N*H*W), f32
    gK/beK_ref : (1, WCp)             per-lane BN gamma / beta, f32
    out_ref    : (NH, WCp)            packed output (lane-dense, 128-wide), f32
    """
    NH, WCp = x_ref.shape
    KH = shift_ref.shape[0]
    proj = proj_ref[...]

    def conv(lhs, band_ref):
        # One wide bf16 MXU matmul covers all KH*KW taps + W-direction SAME padding;
        # conv bias omitted (cancelled by training-mode BN).
        z = jnp.dot(lhs.astype(jnp.bfloat16), band_ref[...],
                    preferred_element_type=jnp.float32)              # (NH, KH*WCp)
        acc = jnp.zeros((NH, WCp), jnp.float32)
        for dy in range(KH):
            # Tiny shift matmuls apply vertical tap dy + H zero padding per image.
            acc = acc + jnp.dot(shift_ref[dy], z[:, dy * WCp:(dy + 1) * WCp],
                                preferred_element_type=jnp.float32)
        return acc

    def batchnorm(acc, g_ref, be_ref):
        # One-pass biased batch stats in f32 (PyTorch training-mode forward).
        colsum = jnp.sum(acc, axis=0, keepdims=True)                 # (1, WCp)
        colsumsq = jnp.sum(acc * acc, axis=0, keepdims=True)         # (1, WCp)
        mean = jnp.dot(colsum, proj, preferred_element_type=jnp.float32)    # per-lane E[x]
        msq = jnp.dot(colsumsq, proj, preferred_element_type=jnp.float32)   # per-lane E[x^2]
        var = jnp.maximum(msq - mean * mean, 0.0)    # clamp: one-pass cancellation guard
        scale = g_ref[...] * lax.rsqrt(var + EPS)                    # EUP rsqrt
        offset = be_ref[...] - mean * scale
        return acc * scale + offset

    x = x_ref[...]
    h1 = jnp.maximum(batchnorm(conv(x, band1_ref), g1_ref, be1_ref), 0.0)
    h2 = batchnorm(conv(h1, band2_ref), g2_ref, be2_ref)              # h1 never leaves VMEM
    out_ref[...] = jnp.maximum(h2 + x, 0.0)


@jax.jit
def residual_block(x_nchw, prep):
    """Forward pass of ResidualBlock. x_nchw: (N, C, H, W) float32 -> NCHW output."""
    band1, band2, shift, proj, g1, be1, g2, be2 = prep
    N, C, H, W = x_nchw.shape
    WCp = proj.shape[0]
    Cp = WCp // W
    NH = N * H

    # NCHW -> lane-dense packed (N*H, W*Cp); channels padded to Cp and interleaved
    # with W on the 128-lane axis.
    x = jnp.transpose(x_nchw, (0, 2, 3, 1)).astype(jnp.float32)
    x = jnp.pad(x, ((0, 0), (0, 0), (0, 0), (0, Cp - C))).reshape(NH, WCp)

    out = pl.pallas_call(
        residual_block_kernel,
        out_shape=jax.ShapeDtypeStruct((NH, WCp), jnp.float32),
        in_specs=[pl.BlockSpec(memory_space=pltpu.MemorySpace.VMEM)] * 9,
        out_specs=pl.BlockSpec(memory_space=pltpu.MemorySpace.VMEM),
    )(x, band1, band2, shift, proj, g1, be1, g2, be2)

    return jnp.transpose(out.reshape(N, H, W, Cp)[..., :C], (0, 3, 1, 2))


# --------------------------------------------------------------------------------------
# Pure-JAX reference (PyTorch training-mode forward, with conv biases)
# --------------------------------------------------------------------------------------
def reference(x_nchw, params):
    w1, b1, g1, be1, w2, b2, g2, be2 = params

    def conv(x, w, b):
        y = lax.conv_general_dilated(
            x, w, window_strides=(1, 1), padding="SAME",
            dimension_numbers=("NCHW", "HWIO", "NCHW"))
        return y + b.reshape(1, -1, 1, 1)

    def bn(x, g, be):
        mean = jnp.mean(x, axis=(0, 2, 3), keepdims=True)
        var = jnp.mean((x - mean) ** 2, axis=(0, 2, 3), keepdims=True)
        return ((x - mean) * lax.rsqrt(var + EPS)
                * g.reshape(1, -1, 1, 1) + be.reshape(1, -1, 1, 1))

    h = jax.nn.relu(bn(conv(x_nchw, w1, b1), g1, be1))
    h = bn(conv(h, w2, b2), g2, be2)
    return jax.nn.relu(h + x_nchw)


if __name__ == "__main__":
    key = jax.random.PRNGKey(0)
    N, C, H, W = 2, 4, 16, 16   # in_channels == out_channels (required by `out += x`)
    K = 3
    ks = jax.random.split(key, 9)

    x = jax.random.normal(ks[0], (N, C, H, W), jnp.float32)

    s = 0.1
    w1 = jax.random.normal(ks[1], (K, K, C, C), jnp.float32) * s
    b1 = jax.random.normal(ks[2], (1, C), jnp.float32) * s
    g1 = 1.0 + 0.1 * jax.random.normal(ks[3], (1, C), jnp.float32)
    be1 = jax.random.normal(ks[4], (1, C), jnp.float32) * s
    w2 = jax.random.normal(ks[5], (K, K, C, C), jnp.float32) * s
    b2 = jax.random.normal(ks[6], (1, C), jnp.float32) * s
    g2 = 1.0 + 0.1 * jax.random.normal(ks[7], (1, C), jnp.float32)
    be2 = jax.random.normal(ks[8], (1, C), jnp.float32) * s
    params = (w1, b1, g1, be1, w2, b2, g2, be2)

    prep = prepare_residual_block(params, x.shape)   # built once, reused every forward
    out = jax.block_until_ready(residual_block(x, prep))
    ref = reference(x, params)

    assert out.shape == x.shape and out.dtype == jnp.float32
    # bf16 MXU inputs (per perf review) vs. an all-f32 reference: expect O(1e-2) deviations.
    err = jnp.max(jnp.abs(out - ref))
    assert jnp.allclose(out, ref, atol=5e-2, rtol=5e-2), f"mismatch: max abs err = {err}"
    print("KERNEL_OK")
</pallas_src>

<mosaic_0001>
module attributes {stable_mosaic.version = 11 : i64} {
  func.func @residual_block_kernel(%arg0: memref<32x128xf32, #tpu.memory_space<vmem>>, %arg1: memref<128x384xbf16, #tpu.memory_space<vmem>>, %arg2: memref<128x384xbf16, #tpu.memory_space<vmem>>, %arg3: memref<3x32x32xf32, #tpu.memory_space<vmem>>, %arg4: memref<128x128xf32, #tpu.memory_space<vmem>>, %arg5: memref<1x128xf32, #tpu.memory_space<vmem>>, %arg6: memref<1x128xf32, #tpu.memory_space<vmem>>, %arg7: memref<1x128xf32, #tpu.memory_space<vmem>>, %arg8: memref<1x128xf32, #tpu.memory_space<vmem>>, %arg9: memref<32x128xf32, #tpu.memory_space<vmem>>) attributes {dimension_semantics = [], scalar_prefetch = 0 : i64, scratch_operands = 0 : i64, tpu.core_type = #tpu.core_type<tc>} {
    %c0 = arith.constant 0 : index
    %c0_0 = arith.constant 0 : index
    %0 = vector.load %arg4[%c0, %c0_0] : memref<128x128xf32, #tpu.memory_space<vmem>>, vector<128x128xf32>
    %c0_1 = arith.constant 0 : index
    %c0_2 = arith.constant 0 : index
    %1 = vector.load %arg0[%c0_1, %c0_2] : memref<32x128xf32, #tpu.memory_space<vmem>>, vector<32x128xf32>
    %2 = arith.truncf %1 : vector<32x128xf32> to vector<32x128xbf16>
    %c0_3 = arith.constant 0 : index
    %c0_4 = arith.constant 0 : index
    %3 = vector.load %arg1[%c0_3, %c0_4] : memref<128x384xbf16, #tpu.memory_space<vmem>>, vector<128x384xbf16>
    %cst = arith.constant dense<0.000000e+00> : vector<32x384xf32>
    %4 = tpu.matmul %2, %3, %cst {dimension_numbers = #tpu.dot_dimension_numbers<[1], [0], [0], [1], [0, 0, 1, 1], [], []>} : vector<32x128xbf16>, vector<128x384xbf16>, vector<32x384xf32> -> vector<32x384xf32>
    %cst_5 = arith.constant 0.000000e+00 : f32
    %5 = vector.broadcast %cst_5 : f32 to vector<32x128xf32>
    %c0_6 = arith.constant 0 : index
    %c0_7 = arith.constant 0 : index
    %c0_8 = arith.constant 0 : index
    %6 = vector.load %arg3[%c0_6, %c0_7, %c0_8] : memref<3x32x32xf32, #tpu.memory_space<vmem>>, vector<1x32x32xf32>
    %7 = vector.shape_cast %6 : vector<1x32x32xf32> to vector<32x32xf32>
    %8 = vector.extract_strided_slice %4 {offsets = [0, 0], sizes = [32, 128], strides = [1, 1]} : vector<32x384xf32> to vector<32x128xf32>
    %cst_9 = arith.constant dense<0.000000e+00> : vector<32x128xf32>
    %9 = tpu.matmul %7, %8, %cst_9 {dimension_numbers = #tpu.dot_dimension_numbers<[1], [0], [0], [1], [0, 0, 1, 1], [], []>} : vector<32x32xf32>, vector<32x128xf32>, vector<32x128xf32> -> vector<32x128xf32>
    %10 = arith.addf %5, %9 : vector<32x128xf32>
    %c1 = arith.constant 1 : index
    %c0_10 = arith.constant 0 : index
    %c0_11 = arith.constant 0 : index
    %11 = vector.load %arg3[%c1, %c0_10, %c0_11] : memref<3x32x32xf32, #tpu.memory_space<vmem>>, vector<1x32x32xf32>
    %12 = vector.shape_cast %11 : vector<1x32x32xf32> to vector<32x32xf32>
    %13 = vector.extract_strided_slice %4 {offsets = [0, 128], sizes = [32, 128], strides = [1, 1]} : vector<32x384xf32> to vector<32x128xf32>
    %cst_12 = arith.constant dense<0.000000e+00> : vector<32x128xf32>
    %14 = tpu.matmul %12, %13, %cst_12 {dimension_numbers = #tpu.dot_dimension_numbers<[1], [0], [0], [1], [0, 0, 1, 1], [], []>} : vector<32x32xf32>, vector<32x128xf32>, vector<32x128xf32> -> vector<32x128xf32>
    %15 = arith.addf %10, %14 : vector<32x128xf32>
    %c2 = arith.constant 2 : index
    %c0_13 = arith.constant 0 : index
    %c0_14 = arith.constant 0 : index
    %16 = vector.load %arg3[%c2, %c0_13, %c0_14] : memref<3x32x32xf32, #tpu.memory_space<vmem>>, vector<1x32x32xf32>
    %17 = vector.shape_cast %16 : vector<1x32x32xf32> to vector<32x32xf32>
    %18 = vector.extract_strided_slice %4 {offsets = [0, 256], sizes = [32, 128], strides = [1, 1]} : vector<32x384xf32> to vector<32x128xf32>
    %cst_15 = arith.constant dense<0.000000e+00> : vector<32x128xf32>
    %19 = tpu.matmul %17, %18, %cst_15 {dimension_numbers = #tpu.dot_dimension_numbers<[1], [0], [0], [1], [0, 0, 1, 1], [], []>} : vector<32x32xf32>, vector<32x128xf32>, vector<32x128xf32> -> vector<32x128xf32>
    %20 = arith.addf %15, %19 : vector<32x128xf32>
    %cst_16 = arith.constant dense<0.000000e+00> : vector<128xf32>
    %21 = vector.multi_reduction <add>, %20, %cst_16 [0] : vector<32x128xf32> to vector<128xf32>
    %22 = vector.shape_cast %21 : vector<128xf32> to vector<1x128xf32>
    %23 = arith.mulf %20, %20 : vector<32x128xf32>
    %cst_17 = arith.constant dense<0.000000e+00> : vector<128xf32>
    %24 = vector.multi_reduction <add>, %23, %cst_17 [0] : vector<32x128xf32> to vector<128xf32>
    %25 = vector.shape_cast %24 : vector<128xf32> to vector<1x128xf32>
    %cst_18 = arith.constant dense<0.000000e+00> : vector<1x128xf32>
    %26 = tpu.matmul %22, %0, %cst_18 {dimension_numbers = #tpu.dot_dimension_numbers<[1], [0], [0], [1], [0, 0, 1, 1], [], []>} : vector<1x128xf32>, vector<128x128xf32>, vector<1x128xf32> -> vector<1x128xf32>
    %cst_19 = arith.constant dense<0.000000e+00> : vector<1x128xf32>
    %27 = tpu.matmul %25, %0, %cst_19 {dimension_numbers = #tpu.dot_dimension_numbers<[1], [0], [0], [1], [0, 0, 1, 1], [], []>} : vector<1x128xf32>, vector<128x128xf32>, vector<1x128xf32> -> vector<1x128xf32>
    %28 = arith.mulf %26, %26 : vector<1x128xf32>
    %29 = arith.subf %27, %28 : vector<1x128xf32>
    %cst_20 = arith.constant 0.000000e+00 : f32
    %30 = vector.broadcast %cst_20 : f32 to vector<1x128xf32>
    %31 = arith.maximumf %29, %30 : vector<1x128xf32>
    %c0_21 = arith.constant 0 : index
    %c0_22 = arith.constant 0 : index
    %32 = vector.load %arg5[%c0_21, %c0_22] : memref<1x128xf32, #tpu.memory_space<vmem>>, vector<1x128xf32>
    %cst_23 = arith.constant 9.99999974E-6 : f32
    %33 = vector.broadcast %cst_23 : f32 to vector<1x128xf32>
    %34 = arith.addf %31, %33 : vector<1x128xf32>
    %35 = math.rsqrt %34 : vector<1x128xf32>
    %36 = arith.mulf %32, %35 : vector<1x128xf32>
    %c0_24 = arith.constant 0 : index
    %c0_25 = arith.constant 0 : index
    %37 = vector.load %arg6[%c0_24, %c0_25] : memref<1x128xf32, #tpu.memory_space<vmem>>, vector<1x128xf32>
    %38 = arith.mulf %26, %36 : vector<1x128xf32>
    %39 = arith.subf %37, %38 : vector<1x128xf32>
    %40 = vector.broadcast %36 : vector<1x128xf32> to vector<32x128xf32>
    %41 = arith.mulf %20, %40 : vector<32x128xf32>
    %42 = vector.broadcast %39 : vector<1x128xf32> to vector<32x128xf32>
    %43 = arith.addf %41, %42 : vector<32x128xf32>
    %cst_26 = arith.constant 0.000000e+00 : f32
    %44 = vector.broadcast %cst_26 : f32 to vector<32x128xf32>
    %45 = arith.maximumf %43, %44 : vector<32x128xf32>
    %46 = arith.truncf %45 : vector<32x128xf32> to vector<32x128xbf16>
    %c0_27 = arith.constant 0 : index
    %c0_28 = arith.constant 0 : index
    %47 = vector.load %arg2[%c0_27, %c0_28] : memref<128x384xbf16, #tpu.memory_space<vmem>>, vector<128x384xbf16>
    %cst_29 = arith.constant dense<0.000000e+00> : vector<32x384xf32>
    %48 = tpu.matmul %46, %47, %cst_29 {dimension_numbers = #tpu.dot_dimension_numbers<[1], [0], [0], [1], [0, 0, 1, 1], [], []>} : vector<32x128xbf16>, vector<128x384xbf16>, vector<32x384xf32> -> vector<32x384xf32>
    %cst_30 = arith.constant 0.000000e+00 : f32
    %49 = vector.broadcast %cst_30 : f32 to vector<32x128xf32>
    %c0_31 = arith.constant 0 : index
    %c0_32 = arith.constant 0 : index
    %c0_33 = arith.constant 0 : index
    %50 = vector.load %arg3[%c0_31, %c0_32, %c0_33] : memref<3x32x32xf32, #tpu.memory_space<vmem>>, vector<1x32x32xf32>
    %51 = vector.shape_cast %50 : vector<1x32x32xf32> to vector<32x32xf32>
    %52 = vector.extract_strided_slice %48 {offsets = [0, 0], sizes = [32, 128], strides = [1, 1]} : vector<32x384xf32> to vector<32x128xf32>
    %cst_34 = arith.constant dense<0.000000e+00> : vector<32x128xf32>
    %53 = tpu.matmul %51, %52, %cst_34 {dimension_numbers = #tpu.dot_dimension_numbers<[1], [0], [0], [1], [0, 0, 1, 1], [], []>} : vector<32x32xf32>, vector<32x128xf32>, vector<32x128xf32> -> vector<32x128xf32>
    %54 = arith.addf %49, %53 : vector<32x128xf32>
    %c1_35 = arith.constant 1 : index
    %c0_36 = arith.constant 0 : index
    %c0_37 = arith.constant 0 : index
    %55 = vector.load %arg3[%c1_35, %c0_36, %c0_37] : memref<3x32x32xf32, #tpu.memory_space<vmem>>, vector<1x32x32xf32>
    %56 = vector.shape_cast %55 : vector<1x32x32xf32> to vector<32x32xf32>
    %57 = vector.extract_strided_slice %48 {offsets = [0, 128], sizes = [32, 128], strides = [1, 1]} : vector<32x384xf32> to vector<32x128xf32>
    %cst_38 = arith.constant dense<0.000000e+00> : vector<32x128xf32>
    %58 = tpu.matmul %56, %57, %cst_38 {dimension_numbers = #tpu.dot_dimension_numbers<[1], [0], [0], [1], [0, 0, 1, 1], [], []>} : vector<32x32xf32>, vector<32x128xf32>, vector<32x128xf32> -> vector<32x128xf32>
    %59 = arith.addf %54, %58 : vector<32x128xf32>
    %c2_39 = arith.constant 2 : index
    %c0_40 = arith.constant 0 : index
    %c0_41 = arith.constant 0 : index
    %60 = vector.load %arg3[%c2_39, %c0_40, %c0_41] : memref<3x32x32xf32, #tpu.memory_space<vmem>>, vector<1x32x32xf32>
    %61 = vector.shape_cast %60 : vector<1x32x32xf32> to vector<32x32xf32>
    %62 = vector.extract_strided_slice %48 {offsets = [0, 256], sizes = [32, 128], strides = [1, 1]} : vector<32x384xf32> to vector<32x128xf32>
    %cst_42 = arith.constant dense<0.000000e+00> : vector<32x128xf32>
    %63 = tpu.matmul %61, %62, %cst_42 {dimension_numbers = #tpu.dot_dimension_numbers<[1], [0], [0], [1], [0, 0, 1, 1], [], []>} : vector<32x32xf32>, vector<32x128xf32>, vector<32x128xf32> -> vector<32x128xf32>
    %64 = arith.addf %59, %63 : vector<32x128xf32>
    %cst_43 = arith.constant dense<0.000000e+00> : vector<128xf32>
    %65 = vector.multi_reduction <add>, %64, %cst_43 [0] : vector<32x128xf32> to vector<128xf32>
    %66 = vector.shape_cast %65 : vector<128xf32> to vector<1x128xf32>
    %67 = arith.mulf %64, %64 : vector<32x128xf32>
    %cst_44 = arith.constant dense<0.000000e+00> : vector<128xf32>
    %68 = vector.multi_reduction <add>, %67, %cst_44 [0] : vector<32x128xf32> to vector<128xf32>
    %69 = vector.shape_cast %68 : vector<128xf32> to vector<1x128xf32>
    %cst_45 = arith.constant dense<0.000000e+00> : vector<1x128xf32>
    %70 = tpu.matmul %66, %0, %cst_45 {dimension_numbers = #tpu.dot_dimension_numbers<[1], [0], [0], [1], [0, 0, 1, 1], [], []>} : vector<1x128xf32>, vector<128x128xf32>, vector<1x128xf32> -> vector<1x128xf32>
    %cst_46 = arith.constant dense<0.000000e+00> : vector<1x128xf32>
    %71 = tpu.matmul %69, %0, %cst_46 {dimension_numbers = #tpu.dot_dimension_numbers<[1], [0], [0], [1], [0, 0, 1, 1], [], []>} : vector<1x128xf32>, vector<128x128xf32>, vector<1x128xf32> -> vector<1x128xf32>
    %72 = arith.mulf %70, %70 : vector<1x128xf32>
    %73 = arith.subf %71, %72 : vector<1x128xf32>
    %cst_47 = arith.constant 0.000000e+00 : f32
    %74 = vector.broadcast %cst_47 : f32 to vector<1x128xf32>
    %75 = arith.maximumf %73, %74 : vector<1x128xf32>
    %c0_48 = arith.constant 0 : index
    %c0_49 = arith.constant 0 : index
    %76 = vector.load %arg7[%c0_48, %c0_49] : memref<1x128xf32, #tpu.memory_space<vmem>>, vector<1x128xf32>
    %cst_50 = arith.constant 9.99999974E-6 : f32
    %77 = vector.broadcast %cst_50 : f32 to vector<1x128xf32>
    %78 = arith.addf %75, %77 : vector<1x128xf32>
    %79 = math.rsqrt %78 : vector<1x128xf32>
    %80 = arith.mulf %76, %79 : vector<1x128xf32>
    %c0_51 = arith.constant 0 : index
    %c0_52 = arith.constant 0 : index
    %81 = vector.load %arg8[%c0_51, %c0_52] : memref<1x128xf32, #tpu.memory_space<vmem>>, vector<1x128xf32>
    %82 = arith.mulf %70, %80 : vector<1x128xf32>
    %83 = arith.subf %81, %82 : vector<1x128xf32>
    %84 = vector.broadcast %80 : vector<1x128xf32> to vector<32x128xf32>
    %85 = arith.mulf %64, %84 : vector<32x128xf32>
    %86 = vector.broadcast %83 : vector<1x128xf32> to vector<32x128xf32>
    %87 = arith.addf %85, %86 : vector<32x128xf32>
    %88 = arith.addf %87, %1 : vector<32x128xf32>
    %cst_53 = arith.constant 0.000000e+00 : f32
    %89 = vector.broadcast %cst_53 : f32 to vector<32x128xf32>
    %90 = arith.maximumf %88, %89 : vector<32x128xf32>
    %c0_54 = arith.constant 0 : index
    %c0_55 = arith.constant 0 : index
    %91 = vector.load %arg9[%c0_54, %c0_55] : memref<32x128xf32, #tpu.memory_space<vmem>>, vector<32x128xf32>
    tpu.vector_store %arg9[%c0_54, %c0_55], %90 {strides = array<i32>} : memref<32x128xf32, #tpu.memory_space<vmem>>, vector<32x128xf32>,
    return
  }
}

</mosaic_0001>

<bundles_post_ra>
// kernel: residual_block.1
= control target key start
LH: loop header
LB: loop body
LE: loop exit
PB: predicated region body
PF: predicated region fallthrough
CT: control target
= control target key end

     0   :  { %vm280_vm0 = vcmask 261120   ;;  %s1880_s1 = inlined_call_operand.vmem [shape: bf16[128,384], index: 1, kind: input, shape index: {}]   ;;  %s1881_s0 = inlined_call_operand.vmem [shape: f32[32,128], index: 0, kind: input, shape index: {}]   ;;  %s1882_s3 = inlined_call_operand.vmem [shape: f32[3,32,32], index: 3, kind: input, shape index: {}]   ;;  %s1883_s4 = inlined_call_operand.vmem [shape: f32[128,128], index: 4, kind: input, shape index: {}]   ;;  %s1884_s2 = inlined_call_operand.vmem [shape: bf16[128,384], index: 2, kind: input, shape index: {}]   ;;  %s1885_s5 = inlined_call_operand.vmem [shape: f32[1,128], index: 5, kind: input, shape index: {}]   ;;  %s1886_s6 = inlined_call_operand.vmem [shape: f32[1,128], index: 6, kind: input, shape index: {}]   ;;  %s1887_s7 = inlined_call_operand.vmem [shape: f32[1,128], index: 7, kind: input, shape index: {}]   ;;  %s1888_s8 = inlined_call_operand.vmem [shape: f32[1,128], index: 8, kind: input, shape index: {}]   ;;  %s1889_s9 = inlined_call_operand.vmem [shape: f32[32,128], index: 9, kind: output, shape index: {}]  }
   0x1   :  { %v1019_v0 = vld [vmem:[%s1880_s1 + $0xa8] sm:$0xf]  ;;  %v1179_v1 = vld [vmem:[%s1880_s1 + $0xb0] sm:$0xf0]  ;;  %v1178_v2 = vld [vmem:[%s1880_s1 + $0xac] sm:$0xf] }
   0x2   :  { %v1020_v3 = vor.u32 %v1179_v1, %v1019_v0  ;;  %v1021_v4 = vld [vmem:[%s1880_s1 + $0xb4] sm:$0xf0]  ;;  %v1027_v5 = vld [vmem:[%s1880_s1 + $0xb0] sm:$0xf]  ;;  %v1180_v6 = vld [vmem:[%s1880_s1 + $0xb8] sm:$0xf0] }
   0x3   :  { %v1024_v7 = vor.u32 %v1178_v2, %v1021_v4  ;;  %v1028_v8 = vor.u32 %v1180_v6, %v1027_v5  ;;  %v1007_v9 = vld [vmem:[%s1880_s1 + $0x90] sm:$0xf]  ;;  %v1176_v10 = vld [vmem:[%s1880_s1 + $0x98] sm:$0xf0]  ;;  %v1175_v11 = vld [vmem:[%s1880_s1 + $0x94] sm:$0xf] }
   0x4   :  { %214 = vmatpush.bf16.msra.mxu0 %v1020_v3  ;;  %v1008_v12 = vor.u32 %v1176_v10, %v1007_v9  ;;  %v1009_v13 = vld [vmem:[%s1880_s1 + $0x9c] sm:$0xf0]  ;;  %v1015_v14 = vld [vmem:[%s1880_s1 + $0x98] sm:$0xf]  ;;  %v1177_v15 = vld [vmem:[%s1880_s1 + $0xa0] sm:$0xf0] }
   0x5   :  { %233 = vmatpush.bf16.msra.mxu1 %v1024_v7  ;;  %252 = vmatpush.bf16.msra.mxu2 %v1028_v8  ;;  %v1012_v16 = vor.u32 %v1175_v11, %v1009_v13  ;;  %v1016_v17 = vor.u32 %v1177_v15, %v1015_v14  ;;  %v995_v18 = vld [vmem:[%s1880_s1 + $0x78] sm:$0xf]  ;;  %v1173_v19 = vld [vmem:[%s1880_s1 + $0x80] sm:$0xf0]  ;;  %v1172_v20 = vld [vmem:[%s1880_s1 + $0x7c] sm:$0xf] }
   0x6   :  { %v997_v21 = vld [vmem:[%s1880_s1 + $0x84] sm:$0xf0]  ;;  %v1003_v22 = vld [vmem:[%s1880_s1 + $0x80] sm:$0xf]  ;;  %v1174_v23 = vld [vmem:[%s1880_s1 + $0x88] sm:$0xf0]  ;;  %v996_v24 = vor.u32 %v1173_v19, %v995_v18 }
   0x7   :  { %v1000_v25 = vor.u32 %v1172_v20, %v997_v21  ;;  %v1004_v26 = vor.u32 %v1174_v23, %v1003_v22  ;;  %v983_v27 = vld [vmem:[%s1880_s1 + $0x60] sm:$0xf]  ;;  %v1170_v28 = vld [vmem:[%s1880_s1 + $0x68] sm:$0xf0]  ;;  %v1169_v29 = vld [vmem:[%s1880_s1 + $0x64] sm:$0xf] }
   0x8   :  { %215 = vmatpush.bf16.msra.mxu0 %v1008_v12  ;;  %v985_v30 = vld [vmem:[%s1880_s1 + $0x6c] sm:$0xf0]  ;;  %v991_v31 = vld [vmem:[%s1880_s1 + $0x68] sm:$0xf]  ;;  %v1171_v32 = vld [vmem:[%s1880_s1 + $0x70] sm:$0xf0]  ;;  %v984_v33 = vor.u32 %v1170_v28, %v983_v27 }
   0x9   :  { %234 = vmatpush.bf16.msra.mxu1 %v1012_v16  ;;  %253 = vmatpush.bf16.msra.mxu2 %v1016_v17  ;;  %v988_v34 = vor.u32 %v1169_v29, %v985_v30  ;;  %v992_v35 = vor.u32 %v1171_v32, %v991_v31  ;;  %v971_v36 = vld [vmem:[%s1880_s1 + $0x48] sm:$0xf]  ;;  %v1167_v37 = vld [vmem:[%s1880_s1 + $0x50] sm:$0xf0]  ;;  %v1166_v38 = vld [vmem:[%s1880_s1 + $0x4c] sm:$0xf] }
   0xa   :  { %v973_v39 = vld [vmem:[%s1880_s1 + $0x54] sm:$0xf0]  ;;  %v979_v40 = vld [vmem:[%s1880_s1 + $0x50] sm:$0xf]  ;;  %v1168_v41 = vld [vmem:[%s1880_s1 + $0x58] sm:$0xf0]  ;;  %v972_v42 = vor.u32 %v1167_v37, %v971_v36 }
   0xb   :  { %v976_v43 = vor.u32 %v1166_v38, %v973_v39  ;;  %v980_v44 = vor.u32 %v1168_v41, %v979_v40  ;;  %v959_v45 = vld [vmem:[%s1880_s1 + $0x30] sm:$0xf]  ;;  %v1164_v46 = vld [vmem:[%s1880_s1 + $0x38] sm:$0xf0]  ;;  %v1163_v47 = vld [vmem:[%s1880_s1 + $0x34] sm:$0xf] }
   0xc   :  { %216 = vmatpush.bf16.msra.mxu0 %v996_v24  ;;  %v961_v48 = vld [vmem:[%s1880_s1 + $0x3c] sm:$0xf0]  ;;  %v967_v49 = vld [vmem:[%s1880_s1 + $0x38] sm:$0xf]  ;;  %v1165_v50 = vld [vmem:[%s1880_s1 + $0x40] sm:$0xf0]  ;;  %v960_v51 = vor.u32 %v1164_v46, %v959_v45 }
   0xd   :  { %235 = vmatpush.bf16.msra.mxu1 %v1000_v25  ;;  %254 = vmatpush.bf16.msra.mxu2 %v1004_v26  ;;  %v964_v52 = vor.u32 %v1163_v47, %v961_v48  ;;  %v968_v53 = vor.u32 %v1165_v50, %v967_v49  ;;  %v947_v54 = vld [vmem:[%s1880_s1 + $0x18] sm:$0xf]  ;;  %v1161_v55 = vld [vmem:[%s1880_s1 + $0x20] sm:$0xf0]  ;;  %v1160_v56 = vld [vmem:[%s1880_s1 + $0x1c] sm:$0xf] }
   0xe   :  { %v949_v57 = vld [vmem:[%s1880_s1 + $0x24] sm:$0xf0]  ;;  %v955_v58 = vld [vmem:[%s1880_s1 + $0x20] sm:$0xf]  ;;  %v1162_v59 = vld [vmem:[%s1880_s1 + $0x28] sm:$0xf0]  ;;  %v948_v60 = vor.u32 %v1161_v55, %v947_v54 }
   0xf   :  { %v952_v61 = vor.u32 %v1160_v56, %v949_v57  ;;  %v956_v62 = vor.u32 %v1162_v59, %v955_v58  ;;  %v935_v63 = vld [vmem:[%s1880_s1] sm:$0xf]  ;;  %v1158_v0 = vld [vmem:[%s1880_s1 + $0x8] sm:$0xf0]  ;;  %v1157_v1 = vld [vmem:[%s1880_s1 + $0x4] sm:$0xf] }
  0x10   :  { %217 = vmatpush.bf16.msra.mxu0 %v984_v33  ;;  %v937_v2 = vld [vmem:[%s1880_s1 + $0xc] sm:$0xf0]  ;;  %v943_v3 = vld [vmem:[%s1880_s1 + $0x8] sm:$0xf]  ;;  %v1159_v4 = vld [vmem:[%s1880_s1 + $0x10] sm:$0xf0]  ;;  %v936_v5 = vor.u32 %v1158_v0, %v935_v63 }
  0x11   :  { %236 = vmatpush.bf16.msra.mxu1 %v988_v34  ;;  %255 = vmatpush.bf16.msra.mxu2 %v992_v35  ;;  %v940_v6 = vor.u32 %v1157_v1, %v937_v2  ;;  %v944_v7 = vor.u32 %v1159_v4, %v943_v3  ;;  %v1406_v8 = vld [vmem:[%s1881_s0] sm:$0xff]  ;;  %v1411_v9 = vld [vmem:[%s1881_s0 + $0x8] sm:$0xff]  ;;  %v1418_v11 = vld [vmem:[%s1881_s0 + $0x10] sm:$0xff] }
  0x12   :  { %v52_v10 = vpack.c.bf16 %v1411_v9, %v1406_v8  ;;  %v1423_v12 = vld [vmem:[%s1881_s0 + $0x18] sm:$0xff]  ;;  %v1430_v24 = vld [vmem:[%s1882_s3 + $0x20] sm:$0xff]  ;;  %v1437_v27 = vld [vmem:[%s1882_s3 + $0x28] sm:$0xff] }
  0x13   :  { %v53_v13 = vpack.c.bf16 %v1423_v12, %v1418_v11  ;;  %v1444_v28 = vld [vmem:[%s1882_s3 + $0x40] sm:$0xff]  ;;  %v1451_v29 = vld [vmem:[%s1882_s3 + $0x30] sm:$0xff]  ;;  %v1458_v30 = vld [vmem:[%s1882_s3 + $0x48] sm:$0xff] }
  0x14   :  { %218 = vmatpush.bf16.msra.mxu0 %v972_v42  ;;  %v1465_v31 = vld [vmem:[%s1882_s3 + $0x38] sm:$0xff]  ;;  %v1472_v32 = vld [vmem:[%s1882_s3 + $0x50] sm:$0xff]  ;;  %v1479_v33 = vld [vmem:[%s1882_s3] sm:$0xff] }
  0x15   :  { %237 = vmatpush.bf16.msra.mxu1 %v976_v43  ;;  %256 = vmatpush.bf16.msra.mxu2 %v980_v44  ;;  %v1484_v34 = vld [vmem:[%s1882_s3 + $0x58] sm:$0xff]  ;;  %v1493_v35 = vld [vmem:[%s1882_s3 + $0x8] sm:$0xff]  ;;  %v1500_v36 = vld [vmem:[%s1882_s3 + $0x10] sm:$0xff] }
  0x16   :  { %v1507_v37 = vld [vmem:[%s1882_s3 + $0x18] sm:$0xff]  ;;  %v1521_v41 = vld [vmem:[%s1883_s4 + $0x70] sm:$0xff]  ;;  %v1528_v43 = vld [vmem:[%s1883_s4 + $0x68] sm:$0xff] }
  0x17   :  { %v1514_v40 = vld [vmem:[%s1883_s4 + $0x78] sm:$0xff]  ;;  %v1535_v44 = vld [vmem:[%s1883_s4 + $0x60] sm:$0xff]  ;;  %v1549_v46 = vld [vmem:[%s1883_s4 + $0x50] sm:$0xff] }
  0x18   :  { %219 = vmatpush.bf16.msra.mxu0 %v960_v51  ;;  %v1542_v45 = vld [vmem:[%s1883_s4 + $0x58] sm:$0xff]  ;;  %v1556_v48 = vld [vmem:[%s1883_s4 + $0x48] sm:$0xff]  ;;  %v1563_v50 = vld [vmem:[%s1883_s4 + $0x40] sm:$0xff] }
  0x19   :  { %238 = vmatpush.bf16.msra.mxu1 %v964_v52  ;;  %257 = vmatpush.bf16.msra.mxu2 %v968_v53  ;;  %v1570_v51 = vld [vmem:[%s1883_s4 + $0x38] sm:$0xff]  ;;  %v1577_v52 = vld [vmem:[%s1883_s4 + $0x30] sm:$0xff]  ;;  %v1584_v54 = vld [vmem:[%s1883_s4 + $0x28] sm:$0xff] }
  0x1a   :  { %v1590_v55 = vld [vmem:[%s1883_s4 + $0x20] sm:$0xff]  ;;  %v1596_v56 = vld [vmem:[%s1883_s4 + $0x18] sm:$0xff]  ;;  %v1603_v58 = vld [vmem:[%s1883_s4 + $0x10] sm:$0xff] }
  0x1b   :  { %v1610_v59 = vld [vmem:[%s1883_s4 + $0x8] sm:$0xff] }
  0x1c   :  { %220 = vmatpush.bf16.msra.mxu0 %v948_v60 }
  0x1d   :  { %239 = vmatpush.bf16.msra.mxu1 %v952_v61  ;;  %258 = vmatpush.bf16.msra.mxu2 %v956_v62  ;;  %v1617_v61 = vld [vmem:[%s1883_s4] sm:$0xff] }
  0x20   :  { %221 = vmatpush.bf16.msra.mxu0 %v936_v5 }
  0x21   :  { %240 = vmatpush.bf16.msra.mxu1 %v940_v6  ;;  %259 = vmatpush.bf16.msra.mxu2 %v944_v7 }
  0x23   :  { %222 = vmatmul.bf16.vlgmr.msra.gmra.mxu0 %v52_v10 }
  0x24   :  { %241 = vmatmul.bf16.vlgmr.msra.gmra.mxu1 %v52_v10  ;;  %260 = vmatmul.bf16.vlgmr.msra.gmra.mxu2 %v52_v10 }
  0x25   :  { %435 = vmatpush.msrb.mxu1 %v1514_v40  ;;  %455 = vmatpush.msrb.mxu2 %v1514_v40 }
  0x27   :  { %436 = vmatpush.msrb.mxu1 %v1521_v41  ;;  %456 = vmatpush.msrb.mxu2 %v1521_v41 }
  0x29   :  { %437 = vmatpush.msrb.mxu1 %v1528_v43  ;;  %457 = vmatpush.msrb.mxu2 %v1528_v43 }
  0x2b   :  { %438 = vmatpush.msrb.mxu1 %v1535_v44  ;;  %458 = vmatpush.msrb.mxu2 %v1535_v44 }
  0x2d   :  { %439 = vmatpush.msrb.mxu1 %v1542_v45  ;;  %459 = vmatpush.msrb.mxu2 %v1542_v45 }
  0x2f   :  { %440 = vmatpush.msrb.mxu1 %v1549_v46  ;;  %460 = vmatpush.msrb.mxu2 %v1549_v46 }
  0x31   :  { %441 = vmatpush.msrb.mxu1 %v1556_v48  ;;  %461 = vmatpush.msrb.mxu2 %v1556_v48 }
  0x33   :  { %227 = vmatmul.bf16.gmra.mxu0 %v53_v13  ;;  %442 = vmatpush.msrb.mxu1 %v1563_v50 }
  0x34   :  { %246 = vmatmul.bf16.gmra.mxu1 %v53_v13  ;;  %265 = vmatmul.bf16.gmra.mxu2 %v53_v13 }
  0x35   :  { %462 = vmatpush.msrb.mxu2 %v1563_v50  ;;  %443 = vmatpush.msrb.mxu1 %v1570_v51 }
  0x37   :  { %463 = vmatpush.msrb.mxu2 %v1570_v51  ;;  %444 = vmatpush.msrb.mxu1 %v1577_v52 }
  0x39   :  { %464 = vmatpush.msrb.mxu2 %v1577_v52  ;;  %445 = vmatpush.msrb.mxu1 %v1584_v54 }
  0x3b   :  { %465 = vmatpush.msrb.mxu2 %v1584_v54  ;;  %446 = vmatpush.msrb.mxu1 %v1590_v55 }
  0x3d   :  { %466 = vmatpush.msrb.mxu2 %v1590_v55  ;;  %447 = vmatpush.msrb.mxu1 %v1596_v56 }
  0x3f   :  { %467 = vmatpush.msrb.mxu2 %v1596_v56  ;;  %448 = vmatpush.msrb.mxu1 %v1603_v58 }
  0x41   :  { %468 = vmatpush.msrb.mxu2 %v1603_v58  ;;  %449 = vmatpush.msrb.mxu1 %v1610_v59 }
  0x43   :  { %469 = vmatpush.msrb.mxu2 %v1610_v59  ;;  %450 = vmatpush.msrb.mxu1 %v1617_v61 }
  0x45   :  { %470 = vmatpush.msrb.mxu2 %v1617_v61 }
  0xa0   :  { %v223_v14 = vpop.f32.mrf.mxu0 }
  0xa1   :  { %v242_v15 = vpop.f32.mrf.mxu1 }
  0xa7   :  { %v261_v16 = vpop.f32.mrf.mxu2 }
  0xa8   :  { %v225_v18 = vpop.f32.mrf.mxu0 }
  0xa9   :  { %v244_v17 = vpop.f32.mrf.mxu1 }
  0xaf   :  { %v263_v19 = vpop.f32.mrf.mxu2 }
  0xb0   :  { %v228_v21 = vpop.f32.mrf.mxu0 }
  0xb1   :  { %v247_v20 = vpop.f32.mrf.mxu1 }
  0xb7   :  { %v266_v22 = vpop.f32.mrf.mxu2 }
  0xb8   :  { %v230_v25 = vpop.f32.mrf.mxu0 }
  0xb9   :  { %v249_v23 = vpop.f32.mrf.mxu1 }
  0xba   :  { %305 = vmatpush.msra.mxu3 %v249_v23 }
  0xbc   :  { %306 = vmatpush.msra.mxu3 %v247_v20 }
  0xbe   :  { %307 = vmatpush.msra.mxu3 %v244_v17 }
  0xbf   :  { %v268_v26 = vpop.f32.mrf.mxu2 }
  0xc0   :  { %308 = vmatpush.msra.mxu3 %v242_v15  ;;  %392 = vmatpush.msrb.mxu0 %v268_v26 }
  0xc1   :  { %1033 = vmatmul.msk.f32.vlgmr.msra.gmra.mxu3 %vm280_vm0, %v1430_v24 }
  0xc2   :  { %346 = vmatpush.msrb.mxu3 %v230_v25  ;;  %393 = vmatpush.msrb.mxu0 %v266_v22 }
  0xc4   :  { %347 = vmatpush.msrb.mxu3 %v228_v21  ;;  %394 = vmatpush.msrb.mxu0 %v263_v19 }
  0xc6   :  { %348 = vmatpush.msrb.mxu3 %v225_v18  ;;  %395 = vmatpush.msrb.mxu0 %v261_v16 }
  0xc7   :  { %1045 = vmatmul.msk.f32.vlgmr.msrb.gmra.mxu0 %vm280_vm0, %v1444_v28 }
  0xc8   :  { %349 = vmatpush.msrb.mxu3 %v223_v14 }
  0xc9   :  { %1034 = vmatmul.msk.f32.gmra.mxu3 %vm280_vm0, %v1437_v27 }
  0xcf   :  { %1046 = vmatmul.msk.f32.gmra.mxu0 %vm280_vm0, %v1458_v30 }
  0xd1   :  { %1035 = vmatmul.msk.f32.gmra.mxu3 %vm280_vm0, %v1451_v29 }
  0xd7   :  { %1047 = vmatmul.msk.f32.gmra.mxu0 %vm280_vm0, %v1472_v32 }
  0xd9   :  { %1036 = vmatmul.msk.f32.gmra.mxu3 %vm280_vm0, %v1465_v31 }
  0xdf   :  { %1048 = vmatmul.msk.f32.gmra.mxu0 %vm280_vm0, %v1484_v34 }
  0xe1   :  { %1037 = vmatmul.msk.f32.vlgmr.msrb.gmra.mxu3 %vm280_vm0, %v1479_v33 }
  0xe9   :  { %1038 = vmatmul.msk.f32.gmra.mxu3 %vm280_vm0, %v1493_v35 }
  0xf1   :  { %1039 = vmatmul.msk.f32.gmra.mxu3 %vm280_vm0, %v1500_v36 }
  0xf9   :  { %1040 = vmatmul.msk.f32.gmra.mxu3 %vm280_vm0, %v1507_v37 }
 0x144   :  { %v310_v38 = vpop.f32.mrf.mxu3  ;;  %v397_v49 = vpop.f32.mrf.mxu0 }
 0x14c   :  { %v313_v39 = vpop.f32.mrf.mxu3  ;;  %v400_v57 = vpop.f32.mrf.mxu0 }
 0x154   :  { %v316_v42 = vpop.f32.mrf.mxu3  ;;  %v403_v62 = vpop.f32.mrf.mxu0 }
 0x15c   :  { %v319_v47 = vpop.f32.mrf.mxu3  ;;  %v406_v10 = vpop.f32.mrf.mxu0 }
 0x164   :  { %v351_v53 = vpop.f32.mrf.mxu3 }
 0x165   :  { %v352_v1 = vadd.f32 %v351_v53, %v310_v38 }
 0x167   :  { %v1625_v4 = vadd.f32 %v397_v49, %v352_v1  ;;  %v1203_v1 = vld [vmem:[%s1884_s2 + $0xb0] sm:$0xf0] }
 0x169   :  { %v422_v13 = vmul.f32 %v1625_v4, %v1625_v4 }
 0x16c   :  { %v354_v60 = vpop.f32.mrf.mxu3 }
 0x16d   :  { %v355_v63 = vadd.f32 %v354_v60, %v313_v39 }
 0x16f   :  { %v1623_v3 = vadd.f32 %v400_v57, %v355_v63 }
 0x171   :  { %v423_v6 = vmul.f32 %v1623_v3, %v1623_v3  ;;  %v413_v14 = vadd.f32 %v1623_v3, %v1625_v4 }
 0x173   :  { %v426_v17 = vadd.f32 %v423_v6, %v422_v13  ;;  %v1204_v13 = vld [vmem:[%s1884_s2 + $0xb8] sm:$0xf0] }
 0x174   :  { %v357_v0 = vpop.f32.mrf.mxu3 }
 0x175   :  { %v358_v2 = vadd.f32 %v357_v0, %v316_v42  ;;  %v1135_v0 = vld [vmem:[%s1884_s2 + $0xa8] sm:$0xf] }
 0x176   :  { %v1136_v6 = vor.u32 %v1203_v1, %v1135_v0  ;;  %v1194_v0 = vld [vmem:[%s1884_s2 + $0x68] sm:$0xf0]  ;;  %v1193_v1 = vld [vmem:[%s1884_s2 + $0x64] sm:$0xf] }
 0x177   :  { %v1627_v5 = vadd.f32 %v403_v62, %v358_v2  ;;  %v1202_v2 = vld [vmem:[%s1884_s2 + $0xac] sm:$0xf] }
 0x178   :  { %674 = vmatpush.bf16.msra.mxu3 %v1136_v6  ;;  %v1101_v6 = vld [vmem:[%s1884_s2 + $0x6c] sm:$0xf0] }
 0x179   :  { %v424_v15 = vmul.f32 %v1627_v5, %v1627_v5  ;;  %v414_v18 = vadd.f32 %v413_v14, %v1627_v5 }
 0x17b   :  { %v427_v20 = vadd.f32 %v426_v17, %v424_v15  ;;  %v1200_v17 = vld [vmem:[%s1884_s2 + $0x98] sm:$0xf0] }
 0x17c   :  { %v360_v7 = vpop.f32.mrf.mxu3 }
 0x17d   :  { %v361_v16 = vadd.f32 %v360_v7, %v319_v47  ;;  %v1137_v7 = vld [vmem:[%s1884_s2 + $0xb4] sm:$0xf0] }
 0x17e   :  { %v1140_v14 = vor.u32 %v1202_v2, %v1137_v7  ;;  %v1107_v7 = vld [vmem:[%s1884_s2 + $0x68] sm:$0xf] }
 0x17f   :  { %v1638_v19 = vadd.f32 %v406_v10, %v361_v16  ;;  %v1143_v10 = vld [vmem:[%s1884_s2 + $0xb0] sm:$0xf] }
 0x180   :  { %v1144_v15 = vor.u32 %v1204_v13, %v1143_v10  ;;  %693 = vmatpush.bf16.msra.mxu0 %v1140_v14  ;;  %v1123_v16 = vld [vmem:[%s1884_s2 + $0x90] sm:$0xf]  ;;  %v1195_v10 = vld [vmem:[%s1884_s2 + $0x70] sm:$0xf0]  ;;  %v1104_v13 = vor.u32 %v1193_v1, %v1101_v6  ;;  %v1184_v1 = vld [vmem:[%s1884_s2 + $0x1c] sm:$0xf] }
 0x181   :  { %v415_v21 = vadd.f32 %v414_v18, %v1638_v19  ;;  %v425_v22 = vmul.f32 %v1638_v19, %v1638_v19  ;;  %v1199_v18 = vld [vmem:[%s1884_s2 + $0x94] sm:$0xf]  ;;  %v1108_v14 = vor.u32 %v1195_v10, %v1107_v7  ;;  %v1065_v7 = vld [vmem:[%s1884_s2 + $0x24] sm:$0xf0]  ;;  %v1071_v10 = vld [vmem:[%s1884_s2 + $0x20] sm:$0xf] }
 0x182   :  { %712 = vmatpush.bf16.msra.mxu1 %v1144_v15  ;;  %v1087_v15 = vld [vmem:[%s1884_s2 + $0x48] sm:$0xf] }
 0x183   :  { %v416_v23 = vrot.slane %v415_v21, 4  ;;  %v428_v25 = vadd.f32 %v427_v20, %v425_v22  ;;  %v1124_v20 = vor.u32 %v1200_v17, %v1123_v16  ;;  %v1131_v22 = vld [vmem:[%s1884_s2 + $0x98] sm:$0xf]  ;;  %v1191_v16 = vld [vmem:[%s1884_s2 + $0x50] sm:$0xf0] }
 0x184   :  { %v1190_v17 = vld [vmem:[%s1884_s2 + $0x4c] sm:$0xf] }
 0x185   :  { %v417_v26 = vadd.f32 %v416_v23, %v415_v21  ;;  %v429_v38 = vrot.slane %v428_v25, 4  ;;  %v1125_v21 = vld [vmem:[%s1884_s2 + $0x9c] sm:$0xf0]  ;;  %v1201_v23 = vld [vmem:[%s1884_s2 + $0xa0] sm:$0xf0]  ;;  %675 = vmatpush.bf16.msra.mxu3 %v1124_v20 }
 0x186   :  { %v1089_v20 = vld [vmem:[%s1884_s2 + $0x54] sm:$0xf0] }
 0x187   :  { %v418_v39 = vrot.slane %v417_v26, 2  ;;  %v430_v42 = vadd.f32 %v429_v38, %v428_v25  ;;  %v1128_v25 = vor.u32 %v1199_v18, %v1125_v21  ;;  %v1111_v38 = vld [vmem:[%s1884_s2 + $0x78] sm:$0xf]  ;;  %v1088_v18 = vor.u32 %v1191_v16, %v1087_v15  ;;  %v1095_v21 = vld [vmem:[%s1884_s2 + $0x50] sm:$0xf] }
 0x188   :  { %v1068_v15 = vor.u32 %v1184_v1, %v1065_v7 }
 0x189   :  { %v419_v49 = vadd.f32 %v418_v39, %v417_v26  ;;  %v431_v53 = vrot.slane %v430_v42, 2  ;;  %v1132_v26 = vor.u32 %v1201_v23, %v1131_v22  ;;  %694 = vmatpush.bf16.msra.mxu0 %v1128_v25  ;;  %v1197_v39 = vld [vmem:[%s1884_s2 + $0x80] sm:$0xf0]  ;;  %v1192_v22 = vld [vmem:[%s1884_s2 + $0x58] sm:$0xf0]  ;;  %v1092_v23 = vor.u32 %v1190_v17, %v1089_v20 }
 0x18a   :  { %v1096_v25 = vor.u32 %v1192_v22, %v1095_v21  ;;  %v1051_v17 = vld [vmem:[%s1884_s2] sm:$0xf]  ;;  %v1181_v20 = vld [vmem:[%s1884_s2 + $0x4] sm:$0xf] }
 0x18b   :  { %v420_v47 = vrot.slane %v419_v49, 1  ;;  %v432_v57 = vadd.f32 %v431_v53, %v430_v42  ;;  %713 = vmatpush.bf16.msra.mxu1 %v1132_v26  ;;  %v1196_v42 = vld [vmem:[%s1884_s2 + $0x7c] sm:$0xf]  ;;  %v1113_v53 = vld [vmem:[%s1884_s2 + $0x84] sm:$0xf0] }
 0x18c   :  { %v1075_v26 = vld [vmem:[%s1884_s2 + $0x30] sm:$0xf] }
 0x18d   :  { %v421_v60 = vadd.f32 %v420_v47, %v419_v49  ;;  %v433_v62 = vrot.slane %v432_v57, 1  ;;  %v1112_v49 = vor.u32 %v1197_v39, %v1111_v38  ;;  %v1119_v47 = vld [vmem:[%s1884_s2 + $0x80] sm:$0xf]  ;;  %v1188_v38 = vld [vmem:[%s1884_s2 + $0x38] sm:$0xf0] }
 0x18e   :  { %v1187_v39 = vld [vmem:[%s1884_s2 + $0x34] sm:$0xf] }
 0x18f   :  { %451 = vmatmul.f32.vlgmr.msrb.gmra.mxu1 %v421_v60  ;;  %v434_v63 = vadd.f32 %v433_v62, %v432_v57  ;;  %v1198_v57 = vld [vmem:[%s1884_s2 + $0x88] sm:$0xf0]  ;;  %v1116_v60 = vor.u32 %v1196_v42, %v1113_v53  ;;  %676 = vmatpush.bf16.msra.mxu3 %v1112_v49  ;;  %v1076_v42 = vor.u32 %v1188_v38, %v1075_v26  ;;  %v1077_v49 = vld [vmem:[%s1884_s2 + $0x3c] sm:$0xf0]  ;;  %v1083_v53 = vld [vmem:[%s1884_s2 + $0x38] sm:$0xf] }
 0x190   :  { %v1120_v62 = vor.u32 %v1198_v57, %v1119_v47  ;;  %v1189_v47 = vld [vmem:[%s1884_s2 + $0x40] sm:$0xf0]  ;;  %v1183_v26 = vld [vmem:[%s1884_s2 + $0x10] sm:$0xf0] }
 0x191   :  { %471 = vmatmul.f32.vlgmr.msrb.gmra.mxu2 %v434_v63  ;;  %695 = vmatpush.bf16.msra.mxu0 %v1116_v60  ;;  %v1099_v63 = vld [vmem:[%s1884_s2 + $0x60] sm:$0xf]  ;;  %v1080_v60 = vor.u32 %v1187_v39, %v1077_v49 }
 0x192   :  { %714 = vmatpush.bf16.msra.mxu1 %v1120_v62  ;;  %v1100_v2 = vor.u32 %v1194_v0, %v1099_v63  ;;  %v1084_v62 = vor.u32 %v1189_v47, %v1083_v53  ;;  %v1063_v63 = vld [vmem:[%s1884_s2 + $0x18] sm:$0xf]  ;;  %v1185_v0 = vld [vmem:[%s1884_s2 + $0x20] sm:$0xf0] }
 0x193   :  { %v1064_v6 = vor.u32 %v1185_v0, %v1063_v63 }
 0x194   :  { %677 = vmatpush.bf16.msra.mxu3 %v1100_v2 }
 0x195   :  { %696 = vmatpush.bf16.msra.mxu0 %v1104_v13  ;;  %v1186_v13 = vld [vmem:[%s1884_s2 + $0x28] sm:$0xf0] }
 0x196   :  { %715 = vmatpush.bf16.msra.mxu1 %v1108_v14  ;;  %v1072_v16 = vor.u32 %v1186_v13, %v1071_v10 }
 0x198   :  { %678 = vmatpush.bf16.msra.mxu3 %v1088_v18  ;;  %v1182_v18 = vld [vmem:[%s1884_s2 + $0x8] sm:$0xf0] }
 0x199   :  { %697 = vmatpush.bf16.msra.mxu0 %v1092_v23  ;;  %v1052_v22 = vor.u32 %v1182_v18, %v1051_v17  ;;  %v1053_v23 = vld [vmem:[%s1884_s2 + $0xc] sm:$0xf0] }
 0x19a   :  { %716 = vmatpush.bf16.msra.mxu1 %v1096_v25  ;;  %v1059_v25 = vld [vmem:[%s1884_s2 + $0x8] sm:$0xf]  ;;  %v1056_v38 = vor.u32 %v1181_v20, %v1053_v23 }
 0x19b   :  { %v1060_v39 = vor.u32 %v1183_v26, %v1059_v25 }
 0x19c   :  { %679 = vmatpush.bf16.msra.mxu3 %v1076_v42 }
 0x19d   :  { %698 = vmatpush.bf16.msra.mxu0 %v1080_v60 }
 0x19e   :  { %717 = vmatpush.bf16.msra.mxu1 %v1084_v62 }
 0x1a0   :  { %680 = vmatpush.bf16.msra.mxu3 %v1064_v6 }
 0x1a1   :  { %699 = vmatpush.bf16.msra.mxu0 %v1068_v15 }
 0x1a2   :  { %718 = vmatpush.bf16.msra.mxu1 %v1072_v16 }
 0x1a4   :  { %681 = vmatpush.bf16.msra.mxu3 %v1052_v22 }
 0x1a5   :  { %700 = vmatpush.bf16.msra.mxu0 %v1056_v38 }
 0x1a6   :  { %719 = vmatpush.bf16.msra.mxu1 %v1060_v39 }
 0x1a9   :  { %844 = vmatpush.msrb.mxu0 %v1514_v40 }
 0x1aa   :  { %864 = vmatpush.msrb.mxu1 %v1514_v40 }
 0x1ab   :  { %845 = vmatpush.msrb.mxu0 %v1521_v41 }
 0x1ac   :  { %865 = vmatpush.msrb.mxu1 %v1521_v41 }
 0x1ad   :  { %846 = vmatpush.msrb.mxu0 %v1528_v43 }
 0x1ae   :  { %866 = vmatpush.msrb.mxu1 %v1528_v43  ;;  %v478_v43 = vld [vmem:[%s1885_s5] sm:$0x1] }
 0x1af   :  { %847 = vmatpush.msrb.mxu0 %v1535_v44 }
 0x1b0   :  { %867 = vmatpush.msrb.mxu1 %v1535_v44 }
 0x1b1   :  { %848 = vmatpush.msrb.mxu0 %v1542_v45 }
 0x1b2   :  { %868 = vmatpush.msrb.mxu1 %v1542_v45 }
 0x1b3   :  { %849 = vmatpush.msrb.mxu0 %v1549_v46 }
 0x1b4   :  { %869 = vmatpush.msrb.mxu1 %v1549_v46 }
 0x1b5   :  { %850 = vmatpush.msrb.mxu0 %v1556_v48 }
 0x1b6   :  { %870 = vmatpush.msrb.mxu1 %v1556_v48  ;;  %v491_v48 = vld [vmem:[%s1886_s6] sm:$0x1] }
 0x1b7   :  { %851 = vmatpush.msrb.mxu0 %v1563_v50 }
 0x1b8   :  { %871 = vmatpush.msrb.mxu1 %v1563_v50 }
 0x1b9   :  { %852 = vmatpush.msrb.mxu0 %v1570_v51 }
 0x1ba   :  { %872 = vmatpush.msrb.mxu1 %v1570_v51 }
 0x1bb   :  { %853 = vmatpush.msrb.mxu0 %v1577_v52 }
 0x1bc   :  { %873 = vmatpush.msrb.mxu1 %v1577_v52 }
 0x1bd   :  { %854 = vmatpush.msrb.mxu0 %v1584_v54 }
 0x1be   :  { %874 = vmatpush.msrb.mxu1 %v1584_v54 }
 0x1bf   :  { %855 = vmatpush.msrb.mxu0 %v1590_v55 }
 0x1c0   :  { %875 = vmatpush.msrb.mxu1 %v1590_v55 }
 0x1c1   :  { %856 = vmatpush.msrb.mxu0 %v1596_v56 }
 0x1c2   :  { %876 = vmatpush.msrb.mxu1 %v1596_v56 }
 0x1c3   :  { %857 = vmatpush.msrb.mxu0 %v1603_v58 }
 0x1c4   :  { %877 = vmatpush.msrb.mxu1 %v1603_v58 }
 0x1c5   :  { %858 = vmatpush.msrb.mxu0 %v1610_v59 }
 0x1c6   :  { %878 = vmatpush.msrb.mxu1 %v1610_v59 }
 0x1c7   :  { %859 = vmatpush.msrb.mxu0 %v1617_v61 }
 0x1c8   :  { %879 = vmatpush.msrb.mxu1 %v1617_v61 }
 0x20c   :  { %v1751_v57 = vpop.f32.mrf.mxu1 }
 0x20d   :  { %v475_v2 = vmul.f32 %v1751_v57, %v1751_v57 }
 0x214   :  { %v472_v14 = vpop.f32.mrf.mxu2 }
 0x215   :  { %v476_v21 = vsub.f32 %v472_v14, %v475_v2 }
 0x217   :  { %v477_v42 = vmax.f32 %v476_v21, 0.0 }
 0x219   :  { %v479_v49 = vadd.f32 1e-05, %v477_v42 }
 0x21b   :  { %1205 = vrsqrt.f32 %v479_v49  ;;  %vm486_vm2 = vweird.f32 %v479_v49 }
 0x221   :  { %v1206_v53 = vpop.eup %1205 }
 0x222   :  { %v481_v47 = vmul.f32 %v1206_v53, %v479_v49  ;;  %vm487_vm1 = vweird.f32 %v1206_v53 }
 0x223   :  { %vm488_vm3 = vmor %vm486_vm2, %vm487_vm1 }
 0x224   :  { %v482_v60 = vmul.f32 %v1206_v53, %v481_v47 }
 0x226   :  { %v483_v40 = vmul.f32 0.5, %v482_v60 }
 0x228   :  { %v484_v41 = vsub.f32 1.5, %v483_v40 }
 0x22a   :  { %v485_v44 = vmul.f32 %v1206_v53, %v484_v41 }
 0x22c   :  { %v489_v45 = vsel %vm488_vm3, %v1206_v53, %v485_v44 }
 0x22d   :  { %v490_v46 = vmul.f32 %v489_v45, %v478_v43 }
 0x22f   :  { %v492_v50 = vmul.f32 %v490_v46, %v1751_v57  ;;  %v495_v62 = vperm.slane %v490_v46, 0 }
 0x231   :  { %v493_v63 = vsub.f32 %v491_v48, %v492_v50  ;;  %v497_v0 = vmul.f32 %v495_v62, %v1625_v4  ;;  %v498_v52 = vmul.f32 %v495_v62, %v1623_v3  ;;  %v499_v56 = vmul.f32 %v495_v62, %v1627_v5 }
 0x232   :  { %v500_v3 = vmul.f32 %v495_v62, %v1638_v19 }
 0x233   :  { %v502_v51 = vperm.slane %v493_v63, 0 }
 0x235   :  { %v504_v57 = vadd.f32 %v502_v51, %v497_v0  ;;  %v505_v1 = vadd.f32 %v502_v51, %v498_v52  ;;  %v506_v4 = vadd.f32 %v502_v51, %v499_v56  ;;  %v507_v58 = vadd.f32 %v502_v51, %v500_v3 }
 0x237   :  { %v508_v54 = vmax.f32 %v504_v57, 0.0  ;;  %v509_v2 = vmax.f32 %v505_v1, 0.0  ;;  %v510_v6 = vmax.f32 %v506_v4, 0.0  ;;  %v511_v7 = vmax.f32 %v507_v58, 0.0 }
 0x239   :  { %v512_v55 = vpack.c.bf16 %v509_v2, %v508_v54  ;;  %v513_v10 = vpack.c.bf16 %v511_v7, %v510_v6 }
 0x23b   :  { %682 = vmatmul.bf16.vlgmr.msra.gmra.mxu3 %v512_v55  ;;  %701 = vmatmul.bf16.vlgmr.msra.gmra.mxu0 %v512_v55 }
 0x23c   :  { %720 = vmatmul.bf16.vlgmr.msra.gmra.mxu1 %v512_v55 }
 0x24b   :  { %687 = vmatmul.bf16.gmra.mxu3 %v513_v10  ;;  %706 = vmatmul.bf16.gmra.mxu0 %v513_v10 }
 0x24c   :  { %725 = vmatmul.bf16.gmra.mxu1 %v513_v10 }
 0x2b8   :  { %v702_v59 = vpop.f32.mrf.mxu0 }
 0x2b9   :  { %v721_v13 = vpop.f32.mrf.mxu1 }
 0x2be   :  { %v683_v14 = vpop.f32.mrf.mxu3 }
 0x2c0   :  { %v704_v15 = vpop.f32.mrf.mxu0 }
 0x2c1   :  { %v723_v61 = vpop.f32.mrf.mxu1 }
 0x2c6   :  { %v685_v16 = vpop.f32.mrf.mxu3 }
 0x2c8   :  { %v707_v17 = vpop.f32.mrf.mxu0 }
 0x2c9   :  { %v726_v18 = vpop.f32.mrf.mxu1 }
 0x2ce   :  { %v688_v20 = vpop.f32.mrf.mxu3 }
 0x2d0   :  { %v709_v5 = vpop.f32.mrf.mxu0 }
 0x2d1   :  { %v728_v21 = vpop.f32.mrf.mxu1  ;;  %743 = vmatpush.msra.mxu2 %v709_v5  ;;  %v900_v5 = vld [vmem:[%s1888_s8] sm:$0x1] }
 0x2d2   :  { %801 = vmatpush.msrb.mxu3 %v728_v21 }
 0x2d3   :  { %744 = vmatpush.msra.mxu2 %v707_v17 }
 0x2d4   :  { %802 = vmatpush.msrb.mxu3 %v726_v18 }
 0x2d5   :  { %745 = vmatpush.msra.mxu2 %v704_v15 }
 0x2d6   :  { %803 = vmatpush.msrb.mxu3 %v723_v61  ;;  %v690_v19 = vpop.f32.mrf.mxu3 }
 0x2d7   :  { %746 = vmatpush.msra.mxu2 %v702_v59 }
 0x2d8   :  { %804 = vmatpush.msrb.mxu3 %v721_v13  ;;  %1145 = vmatmul.msk.f32.vlgmr.msra.gmra.mxu2 %vm280_vm0, %v1430_v24 }
 0x2d9   :  { %772 = vmatpush.msrb.mxu2 %v690_v19  ;;  %1153 = vmatmul.msk.f32.vlgmr.msrb.gmra.mxu3 %vm280_vm0, %v1444_v28 }
 0x2db   :  { %773 = vmatpush.msrb.mxu2 %v688_v20 }
 0x2dd   :  { %774 = vmatpush.msrb.mxu2 %v685_v16  ;;  %v887_v16 = vld [vmem:[%s1887_s7] sm:$0x1] }
 0x2df   :  { %775 = vmatpush.msrb.mxu2 %v683_v14 }
 0x2e0   :  { %1146 = vmatmul.msk.f32.gmra.mxu2 %vm280_vm0, %v1437_v27 }
 0x2e1   :  { %1154 = vmatmul.msk.f32.gmra.mxu3 %vm280_vm0, %v1458_v30 }
 0x2e8   :  { %1147 = vmatmul.msk.f32.gmra.mxu2 %vm280_vm0, %v1451_v29 }
 0x2e9   :  { %1155 = vmatmul.msk.f32.gmra.mxu3 %vm280_vm0, %v1472_v32 }
 0x2f0   :  { %1148 = vmatmul.msk.f32.gmra.mxu2 %vm280_vm0, %v1465_v31 }
 0x2f1   :  { %1156 = vmatmul.msk.f32.gmra.mxu3 %vm280_vm0, %v1484_v34 }
 0x2f8   :  { %1149 = vmatmul.msk.f32.vlgmr.msrb.gmra.mxu2 %vm280_vm0, %v1479_v33 }
 0x300   :  { %1150 = vmatmul.msk.f32.gmra.mxu2 %vm280_vm0, %v1493_v35 }
 0x308   :  { %1151 = vmatmul.msk.f32.gmra.mxu2 %vm280_vm0, %v1500_v36 }
 0x310   :  { %1152 = vmatmul.msk.f32.gmra.mxu2 %vm280_vm0, %v1507_v37 }
 0x35b   :  { %v748_v24 = vpop.f32.mrf.mxu2 }
 0x35c   :  { %v806_v30 = vpop.f32.mrf.mxu3 }
 0x363   :  { %v751_v27 = vpop.f32.mrf.mxu2 }
 0x364   :  { %v809_v32 = vpop.f32.mrf.mxu3 }
 0x36b   :  { %v754_v28 = vpop.f32.mrf.mxu2 }
 0x36c   :  { %v812_v22 = vpop.f32.mrf.mxu3 }
 0x373   :  { %v757_v29 = vpop.f32.mrf.mxu2 }
 0x374   :  { %v815_v49 = vpop.f32.mrf.mxu3 }
 0x37b   :  { %v777_v31 = vpop.f32.mrf.mxu2 }
 0x37c   :  { %v778_v25 = vadd.f32 %v777_v31, %v748_v24 }
 0x37e   :  { %v818_v38 = vadd.f32 %v806_v30, %v778_v25 }
 0x380   :  { %v831_v37 = vmul.f32 %v818_v38, %v818_v38 }
 0x383   :  { %v780_v34 = vpop.f32.mrf.mxu2 }
 0x384   :  { %v781_v23 = vadd.f32 %v780_v34, %v751_v27 }
 0x386   :  { %v819_v35 = vadd.f32 %v809_v32, %v781_v23 }
 0x388   :  { %v832_v36 = vmul.f32 %v819_v35, %v819_v35  ;;  %v822_v53 = vadd.f32 %v819_v35, %v818_v38 }
 0x38a   :  { %v835_v40 = vadd.f32 %v832_v36, %v831_v37 }
 0x38b   :  { %v783_v33 = vpop.f32.mrf.mxu2 }
 0x38c   :  { %v784_v26 = vadd.f32 %v783_v33, %v754_v28 }
 0x38e   :  { %v820_v39 = vadd.f32 %v812_v22, %v784_v26 }
 0x390   :  { %v833_v47 = vmul.f32 %v820_v39, %v820_v39  ;;  %v823_v41 = vadd.f32 %v822_v53, %v820_v39 }
 0x392   :  { %v836_v44 = vadd.f32 %v835_v40, %v833_v47 }
 0x393   :  { %v786_v42 = vpop.f32.mrf.mxu2 }
 0x394   :  { %v787_v60 = vadd.f32 %v786_v42, %v757_v29 }
 0x396   :  { %v821_v43 = vadd.f32 %v815_v49, %v787_v60 }
 0x398   :  { %v824_v45 = vadd.f32 %v823_v41, %v821_v43  ;;  %v834_v46 = vmul.f32 %v821_v43, %v821_v43 }
 0x39a   :  { %v825_v48 = vrot.slane %v824_v45, 4  ;;  %v837_v50 = vadd.f32 %v836_v44, %v834_v46 }
 0x39c   :  { %v826_v62 = vadd.f32 %v825_v48, %v824_v45  ;;  %v838_v63 = vrot.slane %v837_v50, 4 }
 0x39e   :  { %v827_v51 = vrot.slane %v826_v62, 2  ;;  %v839_v0 = vadd.f32 %v838_v63, %v837_v50 }
 0x3a0   :  { %v828_v52 = vadd.f32 %v827_v51, %v826_v62  ;;  %v840_v57 = vrot.slane %v839_v0, 2 }
 0x3a2   :  { %v829_v1 = vrot.slane %v828_v52, 1  ;;  %v841_v54 = vadd.f32 %v840_v57, %v839_v0 }
 0x3a4   :  { %v830_v2 = vadd.f32 %v829_v1, %v828_v52  ;;  %v842_v55 = vrot.slane %v841_v54, 1 }
 0x3a6   :  { %860 = vmatmul.f32.vlgmr.msrb.gmra.mxu0 %v830_v2  ;;  %v843_v56 = vadd.f32 %v842_v55, %v841_v54 }
 0x3a8   :  { %880 = vmatmul.f32.vlgmr.msrb.gmra.mxu1 %v843_v56 }
 0x423   :  { %v861_v3 = vpop.f32.mrf.mxu0 }
 0x424   :  { %v884_v4 = vmul.f32 %v861_v3, %v861_v3 }
 0x425   :  { %v881_v58 = vpop.f32.mrf.mxu1 }
 0x426   :  { %v885_v6 = vsub.f32 %v881_v58, %v884_v4 }
 0x428   :  { %v886_v7 = vmax.f32 %v885_v6, 0.0 }
 0x42a   :  { %v888_v10 = vadd.f32 1e-05, %v886_v7 }
 0x42c   :  { %1207 = vrsqrt.f32 %v888_v10  ;;  %vm895_vm5 = vweird.f32 %v888_v10 }
 0x432   :  { %v1208_v59 = vpop.eup %1207 }
 0x433   :  { %v890_v13 = vmul.f32 %v1208_v59, %v888_v10  ;;  %vm896_vm4 = vweird.f32 %v1208_v59 }
 0x434   :  { %vm897_vm6 = vmor %vm895_vm5, %vm896_vm4 }
 0x435   :  { %v891_v14 = vmul.f32 %v1208_v59, %v890_v13 }
 0x437   :  { %v892_v15 = vmul.f32 0.5, %v891_v14 }
 0x439   :  { %v893_v61 = vsub.f32 1.5, %v892_v15 }
 0x43b   :  { %v894_v17 = vmul.f32 %v1208_v59, %v893_v61 }
 0x43d   :  { %v898_v18 = vsel %vm897_vm6, %v1208_v59, %v894_v17 }
 0x43e   :  { %v899_v20 = vmul.f32 %v898_v18, %v887_v16 }
 0x440   :  { %v901_v21 = vmul.f32 %v899_v20, %v861_v3  ;;  %v904_v19 = vperm.slane %v899_v20, 0 }
 0x442   :  { %v902_v24 = vsub.f32 %v900_v5, %v901_v21  ;;  %v906_v27 = vmul.f32 %v904_v19, %v818_v38  ;;  %v907_v28 = vmul.f32 %v904_v19, %v819_v35  ;;  %v908_v29 = vmul.f32 %v904_v19, %v820_v39 }
 0x443   :  { %v909_v30 = vmul.f32 %v904_v19, %v821_v43 }
 0x444   :  { %v911_v31 = vperm.slane %v902_v24, 0 }
 0x446   :  { %v913_v32 = vadd.f32 %v911_v31, %v906_v27  ;;  %v914_v34 = vadd.f32 %v911_v31, %v907_v28  ;;  %v915_v22 = vadd.f32 %v911_v31, %v908_v29  ;;  %v916_v23 = vadd.f32 %v911_v31, %v909_v30 }
 0x448   :  { %v917_v33 = vadd.f32 %v913_v32, %v1406_v8  ;;  %v918_v25 = vadd.f32 %v914_v34, %v1411_v9  ;;  %v919_v26 = vadd.f32 %v915_v22, %v1418_v11  ;;  %v920_v36 = vadd.f32 %v916_v23, %v1423_v12 }
 0x44a   :  { %v921_v42 = vmax.f32 %v917_v33, 0.0  ;;  %v922_v49 = vmax.f32 %v918_v25, 0.0  ;;  %v923_v37 = vmax.f32 %v919_v26, 0.0  ;;  %v924_v38 = vmax.f32 %v920_v36, 0.0 }
 0x44c   :  { %925 = vst [vmem:[%s1889_s9] sm:$0xff] %v921_v42 }
 0x44d   :  { %926 = vst [vmem:[%s1889_s9 + $0x8] sm:$0xff] %v922_v49 }
 0x44e   :  { %927 = vst [vmem:[%s1889_s9 + $0x10] sm:$0xff] %v923_v37 }
 0x44f   :  { %928 = vst [vmem:[%s1889_s9 + $0x18] sm:$0xff] %v924_v38 }

</bundles_post_ra>
